<compile_context>
chip_gen: v6e
topology: v6e:2x2x1
jax: 0.10.0
libtpu: 0.0.40
codegen_flags: <defaults>
</compile_context>

<pallas_src>
import jax
import jax.numpy as jnp
from jax.experimental import pallas as pl
from jax.experimental.pallas import tpu as pltpu


def _round_up(x, m):
    return ((x + m - 1) // m) * m


def net_kernel(alpha_ref, x_ref, w1_ref, b1_ref, w2_ref, b2_ref, o_ref):
    # hidden = x @ W1 + b1   (f32 operands, f32 MXU accumulation)
    h = jnp.dot(x_ref[...], w1_ref[...], preferred_element_type=jnp.float32)
    h = h + b1_ref[...]                      # (1, n_hidden) broadcasts over rows
    # PReLU with a single shared slope (torch.nn.PReLU default num_parameters=1)
    a = alpha_ref[0]
    h = jnp.where(h > 0, h, a * h)
    # predict = h @ W2 + b2  (h stays VMEM-resident, no HBM round trip)
    o = jnp.dot(h, w2_ref[...], preferred_element_type=jnp.float32)
    o_ref[...] = (o + b2_ref[...]).astype(o_ref.dtype)


def net_forward(x, w1, b1, alpha, w2, b2, *, max_rows_per_step=4096):
    """Forward pass of Net. Weights are (in, out); biases any shape with
    n_hidden / n_output elements; alpha is the shared PReLU slope."""
    f32 = jnp.float32
    x = x.astype(f32)
    batch, n_feature = x.shape
    n_hidden = w1.shape[1]
    n_output = w2.shape[1]

    w1 = w1.astype(f32)
    w2 = w2.astype(f32)
    b1 = jnp.asarray(b1, f32).reshape((1, n_hidden))
    b2 = jnp.asarray(b2, f32).reshape((1, n_output))
    alpha = jnp.asarray(alpha, f32).reshape((1,))

    # Right-size the grid: one step covers the whole batch unless it is huge.
    if batch <= max_rows_per_step:
        tb = batch                      # block == full array dim -> always legal
        b_pad = batch
    else:
        tb = max_rows_per_step          # multiple of 8 -> legal sublane tiling
        b_pad = _round_up(batch, tb)

    grid = (b_pad // tb,)

    if b_pad == batch:
        x_in = x
    else:
        # Only very large batches pay for this row padding; extra rows are
        # garbage after bias/PReLU and get sliced off below.
        x_in = jnp.zeros((b_pad, n_feature), f32).at[:batch].set(x)

    cost = pl.CostEstimate(
        flops=2 * b_pad * (n_feature * n_hidden + n_hidden * n_output),
        transcendentals=0,
        bytes_accessed=4 * (x_in.size + w1.size + b1.size + w2.size + b2.size
                            + b_pad * n_output),
    )

    out = pl.pallas_call(
        net_kernel,
        out_shape=jax.ShapeDtypeStruct((b_pad, n_output), f32),
        grid_spec=pltpu.PrefetchScalarGridSpec(
            num_scalar_prefetch=0,
            grid=grid,
            in_specs=[
                pl.BlockSpec(memory_space=pltpu.SMEM),                 # alpha scalar
                pl.BlockSpec((tb, n_feature), lambda i: (i, 0)),       # x tile (streams)
                pl.BlockSpec((n_feature, n_hidden), lambda i: (0, 0)), # W1 (resident)
                pl.BlockSpec((1, n_hidden), lambda i: (0, 0)),         # b1 (resident)
                pl.BlockSpec((n_hidden, n_output), lambda i: (0, 0)),  # W2 (resident)
                pl.BlockSpec((1, n_output), lambda i: (0, 0)),         # b2 (resident)
            ],
            out_specs=pl.BlockSpec((tb, n_output), lambda i: (i, 0)),  # true width
        ),
        compiler_params=pltpu.CompilerParams(
            dimension_semantics=("parallel",)),   # megacore-shardable when grid > 1
        cost_estimate=cost,
    )(alpha, x_in, w1, b1, w2, b2)

    return out if b_pad == batch else out[:batch]


if __name__ == "__main__":
    # Shapes consistent with Net(n_feature, n_hidden, n_output).
    batch, n_feature, n_hidden, n_output = 256, 32, 64, 16

    key = jax.random.PRNGKey(0)
    kx, kw1, kb1, kw2, kb2 = jax.random.split(key, 5)

    x = jax.random.normal(kx, (batch, n_feature), dtype=jnp.float32)

    # Deterministic parameter init, uniform with torch.nn.Linear's scale.
    lim1 = 1.0 / jnp.sqrt(n_feature)
    w1 = jax.random.uniform(kw1, (n_feature, n_hidden), jnp.float32, -lim1, lim1)
    b1 = jax.random.uniform(kb1, (n_hidden,), jnp.float32, -lim1, lim1)
    lim2 = 1.0 / jnp.sqrt(n_hidden)
    w2 = jax.random.uniform(kw2, (n_hidden, n_output), jnp.float32, -lim2, lim2)
    b2 = jax.random.uniform(kb2, (n_output,), jnp.float32, -lim2, lim2)
    alpha = jnp.array([0.25], dtype=jnp.float32)  # PReLU default init

    out = net_forward(x, w1, b1, alpha, w2, b2)
    out = jax.block_until_ready(out)
    assert out.shape == (batch, n_output)

    # Full-f32 reference matching the PyTorch forward exactly.
    h_ref = x @ w1 + b1[None, :]
    h_ref = jnp.where(h_ref > 0, h_ref, alpha[0] * h_ref)
    ref = h_ref @ w2 + b2[None, :]
    assert jnp.allclose(out, ref, atol=1e-5, rtol=1e-5), (
        float(jnp.max(jnp.abs(out - ref))))

    print("KERNEL_OK")
</pallas_src>

<mosaic_0001>
module attributes {stable_mosaic.version = 11 : i64} {
  func.func @net_kernel(%arg0: i32, %arg1: memref<1xf32, #tpu.memory_space<smem>>, %arg2: memref<256x32xf32, #tpu.memory_space<vmem>>, %arg3: memref<32x64xf32, #tpu.memory_space<vmem>>, %arg4: memref<1x64xf32, #tpu.memory_space<vmem>>, %arg5: memref<64x16xf32, #tpu.memory_space<vmem>>, %arg6: memref<1x16xf32, #tpu.memory_space<vmem>>, %arg7: memref<256x16xf32, #tpu.memory_space<vmem>>) attributes {dimension_semantics = [#tpu.dimension_semantics<parallel>], iteration_bounds = array<i64: 1>, scalar_prefetch = 0 : i64, scratch_operands = 0 : i64, tpu.core_type = #tpu.core_type<tc>, window_params = [{transform_indices = @transform_0, window_bounds = array<i64: 1>}, {transform_indices = @transform_1, window_bounds = array<i64: 256, 32>}, {pipeline_mode = #tpu.pipeline_mode<synchronous>, transform_indices = @transform_2, window_bounds = array<i64: 32, 64>}, {pipeline_mode = #tpu.pipeline_mode<synchronous>, transform_indices = @transform_3, window_bounds = array<i64: 1, 64>}, {pipeline_mode = #tpu.pipeline_mode<synchronous>, transform_indices = @transform_4, window_bounds = array<i64: 64, 16>}, {pipeline_mode = #tpu.pipeline_mode<synchronous>, transform_indices = @transform_5, window_bounds = array<i64: 1, 16>}, {transform_indices = @transform_6, window_bounds = array<i64: 256, 16>}]} {
    %c0 = arith.constant 0 : index
    %c0_0 = arith.constant 0 : index
    %0 = vector.load %arg2[%c0, %c0_0] : memref<256x32xf32, #tpu.memory_space<vmem>>, vector<256x32xf32>
    %c0_1 = arith.constant 0 : index
    %c0_2 = arith.constant 0 : index
    %1 = vector.load %arg3[%c0_1, %c0_2] : memref<32x64xf32, #tpu.memory_space<vmem>>, vector<32x64xf32>
    %cst = arith.constant dense<0.000000e+00> : vector<256x64xf32>
    %2 = tpu.matmul %0, %1, %cst {dimension_numbers = #tpu.dot_dimension_numbers<[1], [0], [0], [1], [0, 0, 1, 1], [], []>} : vector<256x32xf32>, vector<32x64xf32>, vector<256x64xf32> -> vector<256x64xf32>
    %c0_3 = arith.constant 0 : index
    %c0_4 = arith.constant 0 : index
    %3 = vector.load %arg4[%c0_3, %c0_4] : memref<1x64xf32, #tpu.memory_space<vmem>>, vector<1x64xf32>
    %4 = vector.broadcast %3 : vector<1x64xf32> to vector<256x64xf32>
    %5 = arith.addf %2, %4 : vector<256x64xf32>
    %c0_5 = arith.constant 0 : index
    %6 = memref.load %arg1[%c0_5] : memref<1xf32, #tpu.memory_space<smem>>
    %cst_6 = arith.constant 0.000000e+00 : f32
    %7 = vector.broadcast %cst_6 : f32 to vector<256x64xf32>
    %8 = arith.cmpf ogt, %5, %7 : vector<256x64xf32>
    %9 = vector.broadcast %6 : f32 to vector<256x64xf32>
    %10 = arith.mulf %9, %5 : vector<256x64xf32>
    %11 = arith.select %8, %5, %10 : vector<256x64xi1>, vector<256x64xf32>
    %c0_7 = arith.constant 0 : index
    %c0_8 = arith.constant 0 : index
    %12 = vector.load %arg5[%c0_7, %c0_8] : memref<64x16xf32, #tpu.memory_space<vmem>>, vector<64x16xf32>
    %cst_9 = arith.constant dense<0.000000e+00> : vector<256x16xf32>
    %13 = tpu.matmul %11, %12, %cst_9 {dimension_numbers = #tpu.dot_dimension_numbers<[1], [0], [0], [1], [0, 0, 1, 1], [], []>} : vector<256x64xf32>, vector<64x16xf32>, vector<256x16xf32> -> vector<256x16xf32>
    %c0_10 = arith.constant 0 : index
    %c0_11 = arith.constant 0 : index
    %14 = vector.load %arg6[%c0_10, %c0_11] : memref<1x16xf32, #tpu.memory_space<vmem>>, vector<1x16xf32>
    %15 = vector.broadcast %14 : vector<1x16xf32> to vector<256x16xf32>
    %16 = arith.addf %13, %15 : vector<256x16xf32>
    %c0_12 = arith.constant 0 : index
    %c0_13 = arith.constant 0 : index
    %17 = vector.load %arg7[%c0_12, %c0_13] : memref<256x16xf32, #tpu.memory_space<vmem>>, vector<256x16xf32>
    tpu.vector_store %arg7[%c0_12, %c0_13], %16 {strides = array<i32>} : memref<256x16xf32, #tpu.memory_space<vmem>>, vector<256x16xf32>,
    return
  }
  func.func @transform_0(%arg0: i32) -> i32 {
    %c0_i32 = arith.constant 0 : i32
    %c0_i32_0 = arith.constant 0 : i32
    return %c0_i32 : i32
  }
  func.func @transform_1(%arg0: i32) -> (i32, i32) {
    %c0_i32 = arith.constant 0 : i32
    %c0_i32_0 = arith.constant 0 : i32
    return %arg0, %c0_i32 : i32, i32
  }
  func.func @transform_2(%arg0: i32) -> (i32, i32) {
    %c0_i32 = arith.constant 0 : i32
    %c0_i32_0 = arith.constant 0 : i32
    %c0_i32_1 = arith.constant 0 : i32
    return %c0_i32, %c0_i32_0 : i32, i32
  }
  func.func @transform_3(%arg0: i32) -> (i32, i32) {
    %c0_i32 = arith.constant 0 : i32
    %c0_i32_0 = arith.constant 0 : i32
    %c0_i32_1 = arith.constant 0 : i32
    return %c0_i32, %c0_i32_0 : i32, i32
  }
  func.func @transform_4(%arg0: i32) -> (i32, i32) {
    %c0_i32 = arith.constant 0 : i32
    %c0_i32_0 = arith.constant 0 : i32
    %c0_i32_1 = arith.constant 0 : i32
    return %c0_i32, %c0_i32_0 : i32, i32
  }
  func.func @transform_5(%arg0: i32) -> (i32, i32) {
    %c0_i32 = arith.constant 0 : i32
    %c0_i32_0 = arith.constant 0 : i32
    %c0_i32_1 = arith.constant 0 : i32
    return %c0_i32, %c0_i32_0 : i32, i32
  }
  func.func @transform_6(%arg0: i32) -> (i32, i32) {
    %c0_i32 = arith.constant 0 : i32
    %c0_i32_0 = arith.constant 0 : i32
    return %arg0, %c0_i32 : i32, i32
  }
}

</mosaic_0001>

<bundles_post_ra>
// kernel: tpu_custom_call.1
= control target key start
LH: loop header
LB: loop body
LE: loop exit
PB: predicated region body
PF: predicated region fallthrough
CT: control target
= control target key end

     0   :  { %vm67_vm0 = vcmask 261120   ;;  %vm502_vm1 = vcmask 523264   ;;  %s1609_s2 = inlined_call_operand.vmem [shape: f32[32,64], index: 2, kind: input, shape index: {}]   ;;  %s1610_s1 = inlined_call_operand.vmem [shape: f32[256,32], index: 1, kind: input, shape index: {}]   ;;  %s1611_s4 = inlined_call_operand.vmem [shape: f32[64,16], index: 4, kind: input, shape index: {}]   ;;  %s1612_s3 = inlined_call_operand.vmem [shape: f32[1,64], index: 3, kind: input, shape index: {}]   ;;  %s1613_s0 = inlined_call_operand.<no memory space> [shape: f32[1], index: 0, kind: input, shape index: {}]   ;;  %s1614_s5 = inlined_call_operand.vmem [shape: f32[1,16], index: 5, kind: input, shape index: {}]   ;;  %s1615_s6 = inlined_call_operand.vmem [shape: f32[256,16], index: 6, kind: output, shape index: {}]  }
   0x1   :  { %v59_v0 = vld [vmem:[%s1609_s2 + $0x18] sm:$0xff]  ;;  %v58_v1 = vld [vmem:[%s1609_s2 + $0x10] sm:$0xff]  ;;  %v24_v2 = vld [vmem:[%s1610_s1] sm:$0xff]  ;;  %v1347_v47 = vstv %s1613_s0 }
   0x2   :  { %1003 = vmatprep.subr.mxu0 %v59_v0  ;;  %v57_v3 = vld [vmem:[%s1609_s2 + $0x8] sm:$0xff]  ;;  %1011 = vmatprep.mubr.msk.f32.mxu0 %vm67_vm0, %v24_v2  ;;  %v56_v4 = vld [vmem:[%s1609_s2] sm:$0xff]  ;;  %v26_v6 = vld [vmem:[%s1610_s1 + $0x10] sm:$0xff] }
   0x3   :  { %1004 = vmatpush3.msra.mxu0 %v59_v0  ;;  %v25_v5 = vld [vmem:[%s1610_s1 + $0x8] sm:$0xff]  ;;  %v27_v7 = vld [vmem:[%s1610_s1 + $0x18] sm:$0xff]  ;;  %v28_v8 = vld [vmem:[%s1610_s1 + $0x20] sm:$0xff] }
   0x4   :  { %1005 = vmatprep.subr.mxu0 %v58_v1  ;;  %v494_v9 = vld [vmem:[%s1611_s4 + $0x38] sm:$0xff]  ;;  %v493_v10 = vld [vmem:[%s1611_s4 + $0x30] sm:$0xff]  ;;  %v29_v11 = vld [vmem:[%s1610_s1 + $0x28] sm:$0xff] }
   0x5   :  { %1006 = vmatpush3.msra.mxu0 %v58_v1  ;;  %v492_v12 = vld [vmem:[%s1611_s4 + $0x28] sm:$0xff]  ;;  %v30_v13 = vld [vmem:[%s1610_s1 + $0x30] sm:$0xff]  ;;  %1123 = vmatprep.subr.mxu1 %v494_v9  ;;  %v491_v14 = vld [vmem:[%s1611_s4 + $0x20] sm:$0xff] }
   0x6   :  { %1007 = vmatprep.subr.mxu0 %v57_v3  ;;  %1131 = vmatpush3.msra.mxu1 %v494_v9  ;;  %v31_v15 = vld [vmem:[%s1610_s1 + $0x38] sm:$0xff]  ;;  %v32_v16 = vld [vmem:[%s1610_s1 + $0x40] sm:$0xff]  ;;  %v33_v17 = vld [vmem:[%s1610_s1 + $0x48] sm:$0xff] }
   0x7   :  { %1008 = vmatpush3.msra.mxu0 %v57_v3  ;;  %1124 = vmatprep.subr.mxu1 %v493_v10  ;;  %v34_v18 = vld [vmem:[%s1610_s1 + $0x50] sm:$0xff]  ;;  %v35_v19 = vld [vmem:[%s1610_s1 + $0x58] sm:$0xff]  ;;  %v36_v20 = vld [vmem:[%s1610_s1 + $0x60] sm:$0xff] }
   0x8   :  { %1009 = vmatprep.subr.mxu0 %v56_v4  ;;  %1132 = vmatpush3.msra.mxu1 %v493_v10  ;;  %v37_v21 = vld [vmem:[%s1610_s1 + $0x68] sm:$0xff]  ;;  %v38_v22 = vld [vmem:[%s1610_s1 + $0x70] sm:$0xff]  ;;  %v39_v23 = vld [vmem:[%s1610_s1 + $0x78] sm:$0xff] }
   0x9   :  { %1010 = vmatpush3.msra.mxu0 %v56_v4  ;;  %1125 = vmatprep.subr.mxu1 %v492_v12  ;;  %v40_v24 = vld [vmem:[%s1610_s1 + $0x80] sm:$0xff]  ;;  %v41_v25 = vld [vmem:[%s1610_s1 + $0x88] sm:$0xff]  ;;  %v42_v26 = vld [vmem:[%s1610_s1 + $0x90] sm:$0xff] }
   0xa   :  { %1012 = vmatmul.mubr.msk.f32.vlgmr.msra.gmra.mxu0 %vm67_vm0, %v25_v5  ;;  %1059 = vmatprep.subr.mxu0 %v494_v9  ;;  %v43_v27 = vld [vmem:[%s1610_s1 + $0x98] sm:$0xff]  ;;  %v44_v28 = vld [vmem:[%s1610_s1 + $0xa0] sm:$0xff]  ;;  %v45_v29 = vld [vmem:[%s1610_s1 + $0xa8] sm:$0xff] }
   0xb   :  { %1014 = vmatprep.mubr.msk.f32.mxu0 %vm67_vm0, %v26_v6  ;;  %1060 = vmatpush3.msra.mxu0 %v494_v9  ;;  %v46_v30 = vld [vmem:[%s1610_s1 + $0xb0] sm:$0xff]  ;;  %v47_v31 = vld [vmem:[%s1610_s1 + $0xb8] sm:$0xff]  ;;  %v48_v32 = vld [vmem:[%s1610_s1 + $0xc0] sm:$0xff] }
   0xc   :  { %1061 = vmatprep.subr.mxu0 %v493_v10  ;;  %1133 = vmatpush3.msra.mxu1 %v492_v12  ;;  %v49_v33 = vld [vmem:[%s1610_s1 + $0xc8] sm:$0xff]  ;;  %v50_v34 = vld [vmem:[%s1610_s1 + $0xd0] sm:$0xff]  ;;  %v51_v35 = vld [vmem:[%s1610_s1 + $0xd8] sm:$0xff] }
   0xd   :  { %1062 = vmatpush3.msra.mxu0 %v493_v10  ;;  %1126 = vmatprep.subr.mxu1 %v491_v14  ;;  %v52_v36 = vld [vmem:[%s1610_s1 + $0xe0] sm:$0xff]  ;;  %v53_v37 = vld [vmem:[%s1610_s1 + $0xe8] sm:$0xff]  ;;  %v54_v38 = vld [vmem:[%s1610_s1 + $0xf0] sm:$0xff] }
   0xe   :  { %1015 = vmatmul.mubr.msk.f32.gmra.mxu0 %vm67_vm0, %v27_v7  ;;  %1063 = vmatprep.subr.mxu0 %v492_v12  ;;  %v55_v39 = vld [vmem:[%s1610_s1 + $0xf8] sm:$0xff]  ;;  %v489_v41 = vld [vmem:[%s1611_s4 + $0x10] sm:$0xff]  ;;  %v488_v42 = vld [vmem:[%s1611_s4 + $0x8] sm:$0xff] }
   0xf   :  { %1017 = vmatprep.mubr.msk.f32.mxu0 %vm67_vm0, %v28_v8  ;;  %1064 = vmatpush3.msra.mxu0 %v492_v12  ;;  %v490_v40 = vld [vmem:[%s1611_s4 + $0x18] sm:$0xff]  ;;  %v487_v43 = vld [vmem:[%s1611_s4] sm:$0xff] }
  0x10   :  { %1065 = vmatprep.subr.mxu0 %v491_v14  ;;  %1134 = vmatpush3.msra.mxu1 %v491_v14  ;;  %v1341_v44 = vld [vmem:[%s1612_s3] ss:$0 sm:$0xff] }
  0x11   :  { %1066 = vmatpush3.msra.mxu0 %v491_v14  ;;  %1127 = vmatprep.subr.mxu1 %v490_v40 }
  0x12   :  { %1018 = vmatmul.mubr.msk.f32.gmra.mxu0 %vm67_vm0, %v29_v11  ;;  %1067 = vmatprep.subr.mxu0 %v490_v40 }
  0x13   :  { %1020 = vmatprep.mubr.msk.f32.mxu0 %vm67_vm0, %v30_v13  ;;  %1068 = vmatpush3.msra.mxu0 %v490_v40 }
  0x14   :  { %1135 = vmatpush3.msra.mxu1 %v490_v40  ;;  %1069 = vmatprep.subr.mxu0 %v489_v41 }
  0x15   :  { %1128 = vmatprep.subr.mxu1 %v489_v41  ;;  %1070 = vmatpush3.msra.mxu0 %v489_v41 }
  0x16   :  { %1021 = vmatmul.mubr.msk.f32.gmra.mxu0 %vm67_vm0, %v31_v15  ;;  %1136 = vmatpush3.msra.mxu1 %v489_v41 }
  0x17   :  { %1023 = vmatprep.mubr.msk.f32.mxu0 %vm67_vm0, %v32_v16  ;;  %1071 = vmatprep.subr.mxu0 %v488_v42 }
  0x18   :  { %1129 = vmatprep.subr.mxu1 %v488_v42  ;;  %1072 = vmatpush3.msra.mxu0 %v488_v42 }
  0x19   :  { %1137 = vmatpush3.msra.mxu1 %v488_v42  ;;  %1073 = vmatprep.subr.mxu0 %v487_v43 }
  0x1a   :  { %1024 = vmatmul.mubr.msk.f32.gmra.mxu0 %vm67_vm0, %v33_v17  ;;  %1130 = vmatprep.subr.mxu1 %v487_v43 }
  0x1b   :  { %1026 = vmatprep.mubr.msk.f32.mxu0 %vm67_vm0, %v34_v18  ;;  %1074 = vmatpush3.msra.mxu0 %v487_v43 }
  0x1c   :  { %1138 = vmatpush3.msra.mxu1 %v487_v43 }
  0x1e   :  { %1027 = vmatmul.mubr.msk.f32.gmra.mxu0 %vm67_vm0, %v35_v19 }
  0x1f   :  { %1029 = vmatprep.mubr.msk.f32.mxu0 %vm67_vm0, %v36_v20 }
  0x22   :  { %1030 = vmatmul.mubr.msk.f32.gmra.mxu0 %vm67_vm0, %v37_v21 }
  0x23   :  { %1032 = vmatprep.mubr.msk.f32.mxu0 %vm67_vm0, %v38_v22 }
  0x26   :  { %1033 = vmatmul.mubr.msk.f32.gmra.mxu0 %vm67_vm0, %v39_v23 }
  0x27   :  { %1035 = vmatprep.mubr.msk.f32.mxu0 %vm67_vm0, %v40_v24 }
  0x2a   :  { %1036 = vmatmul.mubr.msk.f32.gmra.mxu0 %vm67_vm0, %v41_v25 }
  0x2b   :  { %1038 = vmatprep.mubr.msk.f32.mxu0 %vm67_vm0, %v42_v26 }
  0x2e   :  { %1039 = vmatmul.mubr.msk.f32.gmra.mxu0 %vm67_vm0, %v43_v27 }
  0x2f   :  { %1041 = vmatprep.mubr.msk.f32.mxu0 %vm67_vm0, %v44_v28 }
  0x32   :  { %1042 = vmatmul.mubr.msk.f32.gmra.mxu0 %vm67_vm0, %v45_v29 }
  0x33   :  { %1044 = vmatprep.mubr.msk.f32.mxu0 %vm67_vm0, %v46_v30 }
  0x36   :  { %1045 = vmatmul.mubr.msk.f32.gmra.mxu0 %vm67_vm0, %v47_v31 }
  0x37   :  { %1047 = vmatprep.mubr.msk.f32.mxu0 %vm67_vm0, %v48_v32 }
  0x3a   :  { %1048 = vmatmul.mubr.msk.f32.gmra.mxu0 %vm67_vm0, %v49_v33 }
  0x3b   :  { %1050 = vmatprep.mubr.msk.f32.mxu0 %vm67_vm0, %v50_v34 }
  0x3e   :  { %1051 = vmatmul.mubr.msk.f32.gmra.mxu0 %vm67_vm0, %v51_v35 }
  0x3f   :  { %1053 = vmatprep.mubr.msk.f32.mxu0 %vm67_vm0, %v52_v36 }
  0x42   :  { %1054 = vmatmul.mubr.msk.f32.gmra.mxu0 %vm67_vm0, %v53_v37 }
  0x43   :  { %1056 = vmatprep.mubr.msk.f32.mxu0 %vm67_vm0, %v54_v38 }
  0x46   :  { %1057 = vmatmul.mubr.msk.f32.gmra.mxu0 %vm67_vm0, %v55_v39 }
  0xca   :  { %v1013_v45 = vpop.f32.mrf.mxu0 }
  0xcb   :  { %v236_v46 = vadd.f32 %v1013_v45, %v1341_v44 }
  0xcc   :  { %v230_v48 = vpop.f32.mrf.mxu0 }
  0xcd   :  { %v231_v49 = vadd.f32 %v1341_v44, %v230_v48  ;;  %v424_v50 = vmul.f32 %v1347_v47, %v236_v46  ;;  %vm391_vm2 = vcmp.gt.f32.partialorder %v236_v46, 0.0 }
  0xce   :  { %v1016_v51 = vpop.f32.mrf.mxu0 }
  0xcf   :  { %vm390_vm3 = vcmp.gt.f32.partialorder %v231_v49, 0.0  ;;  %v423_v52 = vmul.f32 %v1347_v47, %v231_v49  ;;  %v246_v53 = vadd.f32 %v1016_v51, %v1341_v44  ;;  %v456_v57 = vsel %vm391_vm2, %v236_v46, %v424_v50 }
  0xd0   :  { %v240_v54 = vpop.f32.mrf.mxu0 }
  0xd1   :  { %v241_v55 = vadd.f32 %v1341_v44, %v240_v54  ;;  %v455_v56 = vsel %vm390_vm3, %v231_v49, %v423_v52  ;;  %v426_v58 = vmul.f32 %v1347_v47, %v246_v53  ;;  %vm393_vm4 = vcmp.gt.f32.partialorder %v246_v53, 0.0 }
  0xd2   :  { %v1019_v59 = vpop.f32.mrf.mxu0  ;;  %1075 = vmatprep.mubr.msk.f32.mxu0 %vm502_vm1, %v455_v56 }
  0xd3   :  { %v256_v60 = vadd.f32 %v1019_v59, %v1341_v44  ;;  %1076 = vmatmul.mubr.msk.f32.vlgmr.msra.gmra.mxu0 %vm502_vm1, %v456_v57  ;;  %vm392_vm5 = vcmp.gt.f32.partialorder %v241_v55, 0.0  ;;  %v425_v61 = vmul.f32 %v1347_v47, %v241_v55  ;;  %v458_v3 = vsel %vm393_vm4, %v246_v53, %v426_v58 }
  0xd4   :  { %v250_v62 = vpop.f32.mrf.mxu0 }
  0xd5   :  { %v251_v63 = vadd.f32 %v1341_v44, %v250_v62  ;;  %v457_v0 = vsel %vm392_vm5, %v241_v55, %v425_v61  ;;  %v428_v1 = vmul.f32 %v1347_v47, %v256_v60  ;;  %vm395_vm6 = vcmp.gt.f32.partialorder %v256_v60, 0.0 }
  0xd6   :  { %v1022_v2 = vpop.f32.mrf.mxu0  ;;  %1078 = vmatprep.mubr.msk.f32.mxu1 %vm502_vm1, %v457_v0 }
  0xd7   :  { %vm394_vm7 = vcmp.gt.f32.partialorder %v251_v63, 0.0  ;;  %v427_v4 = vmul.f32 %v1347_v47, %v251_v63  ;;  %v266_v5 = vadd.f32 %v1022_v2, %v1341_v44  ;;  %1079 = vmatmul.mubr.msk.f32.vlgmr.msra.gmra.mxu1 %vm502_vm1, %v458_v3  ;;  %v460_v11 = vsel %vm395_vm6, %v256_v60, %v428_v1 }
  0xd8   :  { %v260_v6 = vpop.f32.mrf.mxu0 }
  0xd9   :  { %v261_v7 = vadd.f32 %v1341_v44, %v260_v6  ;;  %v459_v8 = vsel %vm394_vm7, %v251_v63, %v427_v4  ;;  %v430_v9 = vmul.f32 %v1347_v47, %v266_v5  ;;  %vm397_vm8 = vcmp.gt.f32.partialorder %v266_v5, 0.0 }
  0xda   :  { %v1025_v10 = vpop.f32.mrf.mxu0  ;;  %1081 = vmatprep.mubr.msk.f32.mxu1 %vm502_vm1, %v459_v8 }
  0xdb   :  { %vm396_vm9 = vcmp.gt.f32.partialorder %v261_v7, 0.0  ;;  %v429_v12 = vmul.f32 %v1347_v47, %v261_v7  ;;  %v276_v13 = vadd.f32 %v1025_v10, %v1341_v44  ;;  %1082 = vmatmul.mubr.msk.f32.gmra.mxu1 %vm502_vm1, %v460_v11  ;;  %v462_v19 = vsel %vm397_vm8, %v266_v5, %v430_v9 }
  0xdc   :  { %v270_v14 = vpop.f32.mrf.mxu0 }
  0xdd   :  { %v271_v15 = vadd.f32 %v1341_v44, %v270_v14  ;;  %v461_v16 = vsel %vm396_vm9, %v261_v7, %v429_v12  ;;  %v432_v17 = vmul.f32 %v1347_v47, %v276_v13  ;;  %vm399_vm10 = vcmp.gt.f32.partialorder %v276_v13, 0.0 }
  0xde   :  { %v1028_v18 = vpop.f32.mrf.mxu0  ;;  %1084 = vmatprep.mubr.msk.f32.mxu1 %vm502_vm1, %v461_v16 }
  0xdf   :  { %vm398_vm11 = vcmp.gt.f32.partialorder %v271_v15, 0.0  ;;  %v431_v20 = vmul.f32 %v1347_v47, %v271_v15  ;;  %v286_v21 = vadd.f32 %v1028_v18, %v1341_v44  ;;  %1085 = vmatmul.mubr.msk.f32.gmra.mxu1 %vm502_vm1, %v462_v19  ;;  %v464_v27 = vsel %vm399_vm10, %v276_v13, %v432_v17 }
  0xe0   :  { %v280_v22 = vpop.f32.mrf.mxu0 }
  0xe1   :  { %v281_v23 = vadd.f32 %v1341_v44, %v280_v22  ;;  %v463_v24 = vsel %vm398_vm11, %v271_v15, %v431_v20  ;;  %v434_v25 = vmul.f32 %v1347_v47, %v286_v21  ;;  %vm401_vm12 = vcmp.gt.f32.partialorder %v286_v21, 0.0 }
  0xe2   :  { %v1031_v26 = vpop.f32.mrf.mxu0  ;;  %1087 = vmatprep.mubr.msk.f32.mxu1 %vm502_vm1, %v463_v24 }
  0xe3   :  { %vm400_vm13 = vcmp.gt.f32.partialorder %v281_v23, 0.0  ;;  %v433_v28 = vmul.f32 %v1347_v47, %v281_v23  ;;  %v296_v29 = vadd.f32 %v1031_v26, %v1341_v44  ;;  %1088 = vmatmul.mubr.msk.f32.gmra.mxu1 %vm502_vm1, %v464_v27  ;;  %v466_v35 = vsel %vm401_vm12, %v286_v21, %v434_v25 }
  0xe4   :  { %v290_v30 = vpop.f32.mrf.mxu0 }
  0xe5   :  { %v291_v31 = vadd.f32 %v1341_v44, %v290_v30  ;;  %v465_v32 = vsel %vm400_vm13, %v281_v23, %v433_v28  ;;  %v436_v33 = vmul.f32 %v1347_v47, %v296_v29  ;;  %vm403_vm14 = vcmp.gt.f32.partialorder %v296_v29, 0.0 }
  0xe6   :  { %v1034_v34 = vpop.f32.mrf.mxu0  ;;  %1090 = vmatprep.mubr.msk.f32.mxu1 %vm502_vm1, %v465_v32 }
  0xe7   :  { %vm402_vm15 = vcmp.gt.f32.partialorder %v291_v31, 0.0  ;;  %v435_v36 = vmul.f32 %v1347_v47, %v291_v31  ;;  %v306_v37 = vadd.f32 %v1034_v34, %v1341_v44  ;;  %1091 = vmatmul.mubr.msk.f32.gmra.mxu1 %vm502_vm1, %v466_v35  ;;  %v468_v43 = vsel %vm403_vm14, %v296_v29, %v436_v33 }
  0xe8   :  { %v300_v38 = vpop.f32.mrf.mxu0 }
  0xe9   :  { %v301_v39 = vadd.f32 %v1341_v44, %v300_v38  ;;  %v467_v40 = vsel %vm402_vm15, %v291_v31, %v435_v36  ;;  %v438_v41 = vmul.f32 %v1347_v47, %v306_v37  ;;  %vm405_vm0 = vcmp.gt.f32.partialorder %v306_v37, 0.0 }
  0xea   :  { %v1037_v42 = vpop.f32.mrf.mxu0  ;;  %1093 = vmatprep.mubr.msk.f32.mxu1 %vm502_vm1, %v467_v40 }
  0xeb   :  { %vm404_vm2 = vcmp.gt.f32.partialorder %v301_v39, 0.0  ;;  %v437_v45 = vmul.f32 %v1347_v47, %v301_v39  ;;  %v316_v46 = vadd.f32 %v1037_v42, %v1341_v44  ;;  %1094 = vmatmul.mubr.msk.f32.gmra.mxu1 %vm502_vm1, %v468_v43  ;;  %v470_v53 = vsel %vm405_vm0, %v306_v37, %v438_v41 }
  0xec   :  { %v310_v48 = vpop.f32.mrf.mxu0 }
  0xed   :  { %v311_v49 = vadd.f32 %v1341_v44, %v310_v48  ;;  %v469_v50 = vsel %vm404_vm2, %v301_v39, %v437_v45  ;;  %v440_v51 = vmul.f32 %v1347_v47, %v316_v46  ;;  %vm407_vm3 = vcmp.gt.f32.partialorder %v316_v46, 0.0 }
  0xee   :  { %v1040_v52 = vpop.f32.mrf.mxu0  ;;  %1096 = vmatprep.mubr.msk.f32.mxu1 %vm502_vm1, %v469_v50 }
  0xef   :  { %vm406_vm4 = vcmp.gt.f32.partialorder %v311_v49, 0.0  ;;  %v439_v54 = vmul.f32 %v1347_v47, %v311_v49  ;;  %v326_v55 = vadd.f32 %v1040_v52, %v1341_v44  ;;  %1097 = vmatmul.mubr.msk.f32.gmra.mxu1 %vm502_vm1, %v470_v53  ;;  %v472_v61 = vsel %vm407_vm3, %v316_v46, %v440_v51 }
  0xf0   :  { %v320_v56 = vpop.f32.mrf.mxu0 }
  0xf1   :  { %v321_v57 = vadd.f32 %v1341_v44, %v320_v56  ;;  %v471_v58 = vsel %vm406_vm4, %v311_v49, %v439_v54  ;;  %v442_v59 = vmul.f32 %v1347_v47, %v326_v55  ;;  %vm409_vm5 = vcmp.gt.f32.partialorder %v326_v55, 0.0 }
  0xf2   :  { %v1043_v60 = vpop.f32.mrf.mxu0  ;;  %1099 = vmatprep.mubr.msk.f32.mxu1 %vm502_vm1, %v471_v58  ;;  %vm824_vm4 = vcmask 130048  }
  0xf3   :  { %vm408_vm6 = vcmp.gt.f32.partialorder %v321_v57, 0.0  ;;  %v441_v62 = vmul.f32 %v1347_v47, %v321_v57  ;;  %v336_v63 = vadd.f32 %v1043_v60, %v1341_v44  ;;  %1100 = vmatmul.mubr.msk.f32.gmra.mxu1 %vm502_vm1, %v472_v61  ;;  %v474_v5 = vsel %vm409_vm5, %v326_v55, %v442_v59 }
  0xf4   :  { %v330_v0 = vpop.f32.mrf.mxu0 }
  0xf5   :  { %v331_v1 = vadd.f32 %v1341_v44, %v330_v0  ;;  %v473_v2 = vsel %vm408_vm6, %v321_v57, %v441_v62  ;;  %v444_v3 = vmul.f32 %v1347_v47, %v336_v63  ;;  %vm411_vm7 = vcmp.gt.f32.partialorder %v336_v63, 0.0 }
  0xf6   :  { %v1046_v4 = vpop.f32.mrf.mxu0  ;;  %1102 = vmatprep.mubr.msk.f32.mxu1 %vm502_vm1, %v473_v2 }
  0xf7   :  { %vm410_vm8 = vcmp.gt.f32.partialorder %v331_v1, 0.0  ;;  %v443_v6 = vmul.f32 %v1347_v47, %v331_v1  ;;  %v346_v7 = vadd.f32 %v1046_v4, %v1341_v44  ;;  %1103 = vmatmul.mubr.msk.f32.gmra.mxu1 %vm502_vm1, %v474_v5  ;;  %v476_v13 = vsel %vm411_vm7, %v336_v63, %v444_v3 }
  0xf8   :  { %v340_v8 = vpop.f32.mrf.mxu0 }
  0xf9   :  { %v341_v9 = vadd.f32 %v1341_v44, %v340_v8  ;;  %v475_v10 = vsel %vm410_vm8, %v331_v1, %v443_v6  ;;  %v446_v11 = vmul.f32 %v1347_v47, %v346_v7  ;;  %vm413_vm9 = vcmp.gt.f32.partialorder %v346_v7, 0.0 }
  0xfa   :  { %v1049_v12 = vpop.f32.mrf.mxu0  ;;  %1105 = vmatprep.mubr.msk.f32.mxu1 %vm502_vm1, %v475_v10 }
  0xfb   :  { %vm412_vm10 = vcmp.gt.f32.partialorder %v341_v9, 0.0  ;;  %v445_v14 = vmul.f32 %v1347_v47, %v341_v9  ;;  %v356_v15 = vadd.f32 %v1049_v12, %v1341_v44  ;;  %1106 = vmatmul.mubr.msk.f32.gmra.mxu1 %vm502_vm1, %v476_v13  ;;  %v478_v21 = vsel %vm413_vm9, %v346_v7, %v446_v11 }
  0xfc   :  { %v350_v16 = vpop.f32.mrf.mxu0 }
  0xfd   :  { %v351_v17 = vadd.f32 %v1341_v44, %v350_v16  ;;  %v477_v18 = vsel %vm412_vm10, %v341_v9, %v445_v14  ;;  %v448_v19 = vmul.f32 %v1347_v47, %v356_v15  ;;  %vm415_vm11 = vcmp.gt.f32.partialorder %v356_v15, 0.0 }
  0xfe   :  { %v1052_v20 = vpop.f32.mrf.mxu0  ;;  %1108 = vmatprep.mubr.msk.f32.mxu1 %vm502_vm1, %v477_v18 }
  0xff   :  { %vm414_vm12 = vcmp.gt.f32.partialorder %v351_v17, 0.0  ;;  %v447_v22 = vmul.f32 %v1347_v47, %v351_v17  ;;  %v366_v23 = vadd.f32 %v1052_v20, %v1341_v44  ;;  %1109 = vmatmul.mubr.msk.f32.gmra.mxu1 %vm502_vm1, %v478_v21  ;;  %v480_v29 = vsel %vm415_vm11, %v356_v15, %v448_v19 }
 0x100   :  { %v360_v24 = vpop.f32.mrf.mxu0 }
 0x101   :  { %v361_v25 = vadd.f32 %v1341_v44, %v360_v24  ;;  %v479_v26 = vsel %vm414_vm12, %v351_v17, %v447_v22  ;;  %v450_v27 = vmul.f32 %v1347_v47, %v366_v23  ;;  %vm417_vm13 = vcmp.gt.f32.partialorder %v366_v23, 0.0 }
 0x102   :  { %v1055_v28 = vpop.f32.mrf.mxu0  ;;  %1111 = vmatprep.mubr.msk.f32.mxu1 %vm502_vm1, %v479_v26 }
 0x103   :  { %vm416_vm14 = vcmp.gt.f32.partialorder %v361_v25, 0.0  ;;  %v449_v30 = vmul.f32 %v1347_v47, %v361_v25  ;;  %v376_v31 = vadd.f32 %v1055_v28, %v1341_v44  ;;  %1112 = vmatmul.mubr.msk.f32.gmra.mxu1 %vm502_vm1, %v480_v29  ;;  %v482_v37 = vsel %vm417_vm13, %v366_v23, %v450_v27 }
 0x104   :  { %v370_v32 = vpop.f32.mrf.mxu0 }
 0x105   :  { %v371_v33 = vadd.f32 %v1341_v44, %v370_v32  ;;  %v481_v34 = vsel %vm416_vm14, %v361_v25, %v449_v30  ;;  %v452_v35 = vmul.f32 %v1347_v47, %v376_v31  ;;  %vm419_vm15 = vcmp.gt.f32.partialorder %v376_v31, 0.0 }
 0x106   :  { %v1058_v36 = vpop.f32.mrf.mxu0  ;;  %1114 = vmatprep.mubr.msk.f32.mxu1 %vm502_vm1, %v481_v34 }
 0x107   :  { %vm418_vm0 = vcmp.gt.f32.partialorder %v371_v33, 0.0  ;;  %v451_v38 = vmul.f32 %v1347_v47, %v371_v33  ;;  %v386_v39 = vadd.f32 %v1058_v36, %v1341_v44  ;;  %1115 = vmatmul.mubr.msk.f32.gmra.mxu1 %vm502_vm1, %v482_v37  ;;  %v484_v45 = vsel %vm419_vm15, %v376_v31, %v452_v35 }
 0x108   :  { %v380_v40 = vpop.f32.mrf.mxu0 }
 0x109   :  { %v381_v41 = vadd.f32 %v1341_v44, %v380_v40  ;;  %v483_v42 = vsel %vm418_vm0, %v371_v33, %v451_v38  ;;  %v454_v43 = vmul.f32 %v1347_v47, %v386_v39  ;;  %vm421_vm2 = vcmp.gt.f32.partialorder %v386_v39, 0.0  ;;  %v1447_v44 = vld [vmem:[%s1614_s5] ss:$0 sm:$0xff] }
 0x10a   :  { %1117 = vmatprep.mubr.msk.f32.mxu1 %vm502_vm1, %v483_v42 }
 0x10b   :  { %vm420_vm3 = vcmp.gt.f32.partialorder %v381_v41, 0.0  ;;  %v453_v46 = vmul.f32 %v1347_v47, %v381_v41  ;;  %1118 = vmatmul.mubr.msk.f32.gmra.mxu1 %vm502_vm1, %v484_v45  ;;  %v486_v49 = vsel %vm421_vm2, %v386_v39, %v454_v43 }
 0x10d   :  { %v485_v48 = vsel %vm420_vm3, %v381_v41, %v453_v46 }
 0x10e   :  { %1120 = vmatprep.mubr.msk.f32.mxu1 %vm502_vm1, %v485_v48 }
 0x10f   :  { %1121 = vmatmul.mubr.msk.f32.gmra.mxu1 %vm502_vm1, %v486_v49 }
 0x193   :  { %v1077_v50 = vpop.f32.mrf.mxu0 }
 0x194   :  { %v671_v51 = vadd.f32 %v1077_v50, %v1447_v44 }
 0x195   :  { %v665_v52 = vpop.f32.mrf.mxu0 }
 0x196   :  { %826 = vst.msk [vmem:[%s1615_s6 + $0x8] sm:$0xff] %vm824_vm4, %v671_v51  ;;  %v666_v47 = vadd.f32 %v1447_v44, %v665_v52 }
 0x197   :  { %v1080_v53 = vpop.f32.mrf.mxu1 }
 0x198   :  { %825 = vst.msk [vmem:[%s1615_s6] sm:$0xff] %vm824_vm4, %v666_v47  ;;  %v681_v54 = vadd.f32 %v1080_v53, %v1447_v44 }
 0x199   :  { %v675_v55 = vpop.f32.mrf.mxu1 }
 0x19a   :  { %828 = vst.msk [vmem:[%s1615_s6 + $0x18] sm:$0xff] %vm824_vm4, %v681_v54  ;;  %v676_v56 = vadd.f32 %v1447_v44, %v675_v55 }
 0x19b   :  { %v1083_v57 = vpop.f32.mrf.mxu1 }
 0x19c   :  { %827 = vst.msk [vmem:[%s1615_s6 + $0x10] sm:$0xff] %vm824_vm4, %v676_v56  ;;  %v691_v58 = vadd.f32 %v1083_v57, %v1447_v44 }
 0x19d   :  { %v685_v59 = vpop.f32.mrf.mxu1 }
 0x19e   :  { %830 = vst.msk [vmem:[%s1615_s6 + $0x28] sm:$0xff] %vm824_vm4, %v691_v58  ;;  %v686_v60 = vadd.f32 %v1447_v44, %v685_v59 }
 0x19f   :  { %v1086_v61 = vpop.f32.mrf.mxu1 }
 0x1a0   :  { %829 = vst.msk [vmem:[%s1615_s6 + $0x20] sm:$0xff] %vm824_vm4, %v686_v60  ;;  %v701_v62 = vadd.f32 %v1086_v61, %v1447_v44 }
 0x1a1   :  { %v695_v63 = vpop.f32.mrf.mxu1 }
 0x1a2   :  { %832 = vst.msk [vmem:[%s1615_s6 + $0x38] sm:$0xff] %vm824_vm4, %v701_v62  ;;  %v696_v0 = vadd.f32 %v1447_v44, %v695_v63 }
 0x1a3   :  { %v1089_v1 = vpop.f32.mrf.mxu1 }
 0x1a4   :  { %831 = vst.msk [vmem:[%s1615_s6 + $0x30] sm:$0xff] %vm824_vm4, %v696_v0  ;;  %v711_v2 = vadd.f32 %v1089_v1, %v1447_v44 }
 0x1a5   :  { %v705_v3 = vpop.f32.mrf.mxu1 }
 0x1a6   :  { %834 = vst.msk [vmem:[%s1615_s6 + $0x48] sm:$0xff] %vm824_vm4, %v711_v2  ;;  %v706_v4 = vadd.f32 %v1447_v44, %v705_v3 }
 0x1a7   :  { %v1092_v5 = vpop.f32.mrf.mxu1 }
 0x1a8   :  { %833 = vst.msk [vmem:[%s1615_s6 + $0x40] sm:$0xff] %vm824_vm4, %v706_v4  ;;  %v721_v6 = vadd.f32 %v1092_v5, %v1447_v44 }
 0x1a9   :  { %v715_v7 = vpop.f32.mrf.mxu1 }
 0x1aa   :  { %836 = vst.msk [vmem:[%s1615_s6 + $0x58] sm:$0xff] %vm824_vm4, %v721_v6  ;;  %v716_v8 = vadd.f32 %v1447_v44, %v715_v7 }
 0x1ab   :  { %v1095_v9 = vpop.f32.mrf.mxu1 }
 0x1ac   :  { %835 = vst.msk [vmem:[%s1615_s6 + $0x50] sm:$0xff] %vm824_vm4, %v716_v8  ;;  %v731_v10 = vadd.f32 %v1095_v9, %v1447_v44 }
 0x1ad   :  { %v725_v11 = vpop.f32.mrf.mxu1 }
 0x1ae   :  { %838 = vst.msk [vmem:[%s1615_s6 + $0x68] sm:$0xff] %vm824_vm4, %v731_v10  ;;  %v726_v12 = vadd.f32 %v1447_v44, %v725_v11 }
 0x1af   :  { %v1098_v13 = vpop.f32.mrf.mxu1 }
 0x1b0   :  { %837 = vst.msk [vmem:[%s1615_s6 + $0x60] sm:$0xff] %vm824_vm4, %v726_v12  ;;  %v741_v14 = vadd.f32 %v1098_v13, %v1447_v44 }
 0x1b1   :  { %v735_v15 = vpop.f32.mrf.mxu1 }
 0x1b2   :  { %840 = vst.msk [vmem:[%s1615_s6 + $0x78] sm:$0xff] %vm824_vm4, %v741_v14  ;;  %v736_v16 = vadd.f32 %v1447_v44, %v735_v15 }
 0x1b3   :  { %v1101_v17 = vpop.f32.mrf.mxu1 }
 0x1b4   :  { %839 = vst.msk [vmem:[%s1615_s6 + $0x70] sm:$0xff] %vm824_vm4, %v736_v16  ;;  %v751_v18 = vadd.f32 %v1101_v17, %v1447_v44 }
 0x1b5   :  { %v745_v19 = vpop.f32.mrf.mxu1 }
 0x1b6   :  { %842 = vst.msk [vmem:[%s1615_s6 + $0x88] sm:$0xff] %vm824_vm4, %v751_v18  ;;  %v746_v20 = vadd.f32 %v1447_v44, %v745_v19 }
 0x1b7   :  { %v1104_v21 = vpop.f32.mrf.mxu1 }
 0x1b8   :  { %841 = vst.msk [vmem:[%s1615_s6 + $0x80] sm:$0xff] %vm824_vm4, %v746_v20  ;;  %v761_v22 = vadd.f32 %v1104_v21, %v1447_v44 }
 0x1b9   :  { %v755_v23 = vpop.f32.mrf.mxu1 }
 0x1ba   :  { %844 = vst.msk [vmem:[%s1615_s6 + $0x98] sm:$0xff] %vm824_vm4, %v761_v22  ;;  %v756_v24 = vadd.f32 %v1447_v44, %v755_v23 }
 0x1bb   :  { %v1107_v25 = vpop.f32.mrf.mxu1 }
 0x1bc   :  { %843 = vst.msk [vmem:[%s1615_s6 + $0x90] sm:$0xff] %vm824_vm4, %v756_v24  ;;  %v771_v26 = vadd.f32 %v1107_v25, %v1447_v44 }
 0x1bd   :  { %v765_v27 = vpop.f32.mrf.mxu1 }
 0x1be   :  { %846 = vst.msk [vmem:[%s1615_s6 + $0xa8] sm:$0xff] %vm824_vm4, %v771_v26  ;;  %v766_v28 = vadd.f32 %v1447_v44, %v765_v27 }
 0x1bf   :  { %v1110_v29 = vpop.f32.mrf.mxu1 }
 0x1c0   :  { %845 = vst.msk [vmem:[%s1615_s6 + $0xa0] sm:$0xff] %vm824_vm4, %v766_v28  ;;  %v781_v30 = vadd.f32 %v1110_v29, %v1447_v44 }
 0x1c1   :  { %v775_v31 = vpop.f32.mrf.mxu1 }
 0x1c2   :  { %848 = vst.msk [vmem:[%s1615_s6 + $0xb8] sm:$0xff] %vm824_vm4, %v781_v30  ;;  %v776_v32 = vadd.f32 %v1447_v44, %v775_v31 }
 0x1c3   :  { %v1113_v33 = vpop.f32.mrf.mxu1 }
 0x1c4   :  { %847 = vst.msk [vmem:[%s1615_s6 + $0xb0] sm:$0xff] %vm824_vm4, %v776_v32  ;;  %v791_v34 = vadd.f32 %v1113_v33, %v1447_v44 }
 0x1c5   :  { %v785_v35 = vpop.f32.mrf.mxu1 }
 0x1c6   :  { %850 = vst.msk [vmem:[%s1615_s6 + $0xc8] sm:$0xff] %vm824_vm4, %v791_v34  ;;  %v786_v36 = vadd.f32 %v1447_v44, %v785_v35 }
 0x1c7   :  { %v1116_v37 = vpop.f32.mrf.mxu1 }
 0x1c8   :  { %849 = vst.msk [vmem:[%s1615_s6 + $0xc0] sm:$0xff] %vm824_vm4, %v786_v36  ;;  %v801_v38 = vadd.f32 %v1116_v37, %v1447_v44 }
 0x1c9   :  { %v795_v39 = vpop.f32.mrf.mxu1 }
 0x1ca   :  { %852 = vst.msk [vmem:[%s1615_s6 + $0xd8] sm:$0xff] %vm824_vm4, %v801_v38  ;;  %v796_v40 = vadd.f32 %v1447_v44, %v795_v39 }
 0x1cb   :  { %v1119_v41 = vpop.f32.mrf.mxu1 }
 0x1cc   :  { %851 = vst.msk [vmem:[%s1615_s6 + $0xd0] sm:$0xff] %vm824_vm4, %v796_v40  ;;  %v811_v42 = vadd.f32 %v1119_v41, %v1447_v44 }
 0x1cd   :  { %v805_v43 = vpop.f32.mrf.mxu1 }
 0x1ce   :  { %854 = vst.msk [vmem:[%s1615_s6 + $0xe8] sm:$0xff] %vm824_vm4, %v811_v42  ;;  %v806_v45 = vadd.f32 %v1447_v44, %v805_v43 }
 0x1cf   :  { %v1122_v46 = vpop.f32.mrf.mxu1 }
 0x1d0   :  { %853 = vst.msk [vmem:[%s1615_s6 + $0xe0] sm:$0xff] %vm824_vm4, %v806_v45  ;;  %v821_v48 = vadd.f32 %v1122_v46, %v1447_v44 }
 0x1d1   :  { %v815_v49 = vpop.f32.mrf.mxu1 }
 0x1d2   :  { %856 = vst.msk [vmem:[%s1615_s6 + $0xf8] sm:$0xff] %vm824_vm4, %v821_v48  ;;  %v816_v50 = vadd.f32 %v1447_v44, %v815_v49 }
 0x1d4   :  { %855 = vst.msk [vmem:[%s1615_s6 + $0xf0] sm:$0xff] %vm824_vm4, %v816_v50 }

</bundles_post_ra>
